<compile_context>
chip_gen: v7x
topology: tpu7x:2x2x1
jax: 0.10.0
libtpu: 0.0.40
codegen_flags: <defaults>
</compile_context>

<pallas_src>
import jax
import jax.numpy as jnp
import numpy as np
from jax import lax
from jax.experimental import pallas as pl
from jax.experimental.pallas import tpu as pltpu


_HALO = 128   # lane-aligned halo tile appended after each time tile (must be >= K-1)


def masked_conv1d_kernel(xm_ref, xh_ref, m_ref, w_ref, b_ref, o_ref):
    # xm_ref : (1, C, tT)    bf16  main time tile of the (conv-)padded input
    # xh_ref : (1, C, 128)   bf16  trailing halo (next 128 columns of padded input)
    # m_ref  : (1, 1, tT)    f32   mask tile
    # w_ref  : (K, Cout, C)  bf16  per-tap weights
    # b_ref  : (Cout, 1)     f32   bias
    # o_ref  : (1, Cout, tT)       output tile
    K = w_ref.shape[0]
    tT = o_ref.shape[2]

    xm = xm_ref[0]                                                    # (C, tT)
    # Tap 0 uses the main tile directly: lane-aligned MXU operand, no copy.
    acc = jnp.dot(w_ref[0], xm, preferred_element_type=jnp.float32)  # (Cout, tT) f32

    if K > 1:
        # Taps k >= 1 read k columns past the tile boundary: assemble the
        # (C, tT + 128) window once from the two lane-aligned blocks (cheap,
        # aligned vreg copies), then take k-shifted slices per tap.
        win = jnp.concatenate([xm, xh_ref[0]], axis=-1)               # (C, tT+128)
        for k in range(1, K):
            acc = acc + jnp.dot(w_ref[k], win[:, k:k + tT],
                                preferred_element_type=jnp.float32)

    # f32 epilogue (bias + mask) - keeps v5e (no bf16 VPU) on the fast path.
    y = (acc + b_ref[...]) * m_ref[0]
    o_ref[0] = y.astype(o_ref.dtype)


def _round_up(x, m):
    return -(-x // m) * m


def _per_step_vmem_bytes(tT, C, Cout, K, out_isz):
    """Rough per-grid-step VMEM footprint for the kernel above."""
    W = tT + _HALO
    # double-buffered streamed blocks: x main, x halo, mask, output
    stream = 2 * (C * tT * 2 + C * _HALO * 2 + tT * 4 + Cout * tT * out_isz)
    # weights + bias (constant blocks, conservatively counted double-buffered)
    consts = 2 * (K * Cout * C * 2 + Cout * 4)
    # in-kernel temporaries: assembled window, one shifted tap operand, f32 acc/y
    temps = C * W * 2 + 2 * C * tT * 2 + 2 * Cout * tT * 4
    return stream + consts + temps


def _pick_time_tile(T, B, C, Cout, K, out_isz, *, cap=2048, vmem_budget=40 << 20):
    """Largest multiple-of-128 time tile (<= cap) that minimizes tail padding and
    fits the VMEM budget, then shrunk if needed so there are >= 4 grid blocks
    (keeps both v7x TensorCores busy)."""
    Tp128 = _round_up(T, 128)
    best = None
    for tT in range(min(cap, Tp128), 0, -128):
        if tT > 128 and _per_step_vmem_bytes(tT, C, Cout, K, out_isz) > vmem_budget:
            continue
        waste = _round_up(Tp128, tT) - Tp128
        key = (waste, -tT)                       # least padding first, then biggest tile
        if best is None or key < best[0]:
            best = (key, tT)
    tT = best[1]
    nT = -(-Tp128 // tT)

    if B * nT < 4:                               # give the pipeline / both TCs work
        want = min(-(-4 // B), Tp128 // 128)
        if want > nT:
            tT = _round_up(-(-Tp128 // want), 128)
            nT = -(-Tp128 // tT)
    return tT, nT


def masked_conv1d_forward(x, mask, weight, bias, *, stride=1, out_dtype=None):
    """MaskedConv1D.forward.

    x      : (B, C, T) float32   (PyTorch NCW layout)
    mask   : (B, 1, T) bool
    weight : (Cout, Cin, K)  Conv1d weight (PyTorch layout), K odd, padding = K//2
    bias   : (Cout,)
    returns (out (B, Cout, T), out_mask (B, 1, T) bool)
    """
    B, C, T = x.shape
    Cout, Cin, K = weight.shape
    assert Cin == C and K % 2 == 1
    # TODO(synk): stride > 1 (strided conv + nearest-mode mask downsampling via
    # F.interpolate) is not implemented in the Pallas path; only stride == 1.
    assert stride == 1
    assert T % stride == 0
    assert K - 1 <= _HALO
    pad = K // 2

    out_dtype = x.dtype if out_dtype is None else out_dtype
    out_isz = np.dtype(out_dtype).itemsize

    tT, nT = _pick_time_tile(T, B, C, Cout, K, out_isz)
    Tp = nT * tT

    # Pad x ONCE: conv halo (pad) on the left, tile-rounding + halo columns on the
    # right.  The kernel's overlapping windows are expressed purely through two
    # lane-aligned BlockSpecs over this array - no overlapping copy is built.
    xp = jnp.pad(x.astype(jnp.bfloat16),
                 ((0, 0), (0, 0), (pad, (Tp - T) + _HALO - pad)))       # (B, C, Tp+128)
    mask_f = jnp.pad(mask.astype(jnp.float32),
                     ((0, 0), (0, 0), (0, Tp - T)))                     # (B, 1, Tp)
    w_taps = jnp.transpose(weight, (2, 0, 1)).astype(jnp.bfloat16)      # (K, Cout, C)
    b_col = bias.reshape(Cout, 1).astype(jnp.float32)                   # (Cout, 1)

    halo_blocks_per_tile = tT // _HALO           # halo block index step (128-wide blocks)

    vmem_need = _per_step_vmem_bytes(tT, C, Cout, K, out_isz)
    vmem_limit = min(max(int(vmem_need * 1.25) + (4 << 20), 16 << 20), 64 << 20)

    out = pl.pallas_call(
        masked_conv1d_kernel,
        out_shape=jax.ShapeDtypeStruct((B, Cout, Tp), out_dtype),
        grid_spec=pltpu.PrefetchScalarGridSpec(
            num_scalar_prefetch=0,
            grid=(B, nT),
            in_specs=[
                # main time tile of xp: columns [j*tT, (j+1)*tT)
                pl.BlockSpec((1, C, tT), lambda b, j: (b, 0, j)),
                # trailing halo tile of xp: columns [(j+1)*tT, (j+1)*tT + 128)
                pl.BlockSpec((1, C, _HALO),
                             lambda b, j: (b, 0, (j + 1) * halo_blocks_per_tile)),
                pl.BlockSpec((1, 1, tT), lambda b, j: (b, 0, j)),
                # weights / bias: constant block index -> fetched once, reused
                pl.BlockSpec((K, Cout, C), lambda b, j: (0, 0, 0)),
                pl.BlockSpec((Cout, 1), lambda b, j: (0, 0)),
            ],
            out_specs=pl.BlockSpec((1, Cout, tT), lambda b, j: (b, 0, j)),
        ),
        compiler_params=pltpu.CompilerParams(
            dimension_semantics=("parallel", "parallel"),
            vmem_limit_bytes=vmem_limit,
        ),
    )(xp, xp, mask_f, w_taps, b_col)

    if Tp != T:
        out = out[:, :, :T]
    out_mask = mask.astype(jnp.bool_)            # stride == 1 -> mask unchanged
    return out, out_mask


def ref_masked_conv1d(x, mask, weight, bias, stride=1):
    """Pure-JAX f32 reference mirroring the PyTorch module (NCW layout)."""
    pad = weight.shape[-1] // 2
    dn = ("NCH", "OIH", "NCH")
    y = lax.conv_general_dilated(x, weight, (stride,), ((pad, pad),),
                                 dimension_numbers=dn)
    y = (y + bias[None, :, None]) * mask.astype(x.dtype)
    return y, mask.astype(jnp.bool_)


if __name__ == "__main__":
    def run_case(B, C, T, Cout, K, lengths, key):
        kx, kw, kb = jax.random.split(key, 3)
        x = jax.random.normal(kx, (B, C, T), dtype=jnp.float32)
        mask = (jnp.arange(T)[None, None, :]
                < jnp.asarray(lengths)[:, None, None])                  # (B,1,T) bool
        weight = 0.1 * jax.random.normal(kw, (Cout, C, K), dtype=jnp.float32)
        bias = 0.05 * jax.random.normal(kb, (Cout,), dtype=jnp.float32)

        out, out_mask = masked_conv1d_forward(x, mask, weight, bias)
        out = jax.block_until_ready(out)
        out_mask = jax.block_until_ready(out_mask)

        ref_out, ref_mask = ref_masked_conv1d(x, mask, weight, bias)
        # bf16 MXU operands with f32 accumulation -> loosened tolerance vs f32 ref.
        np.testing.assert_allclose(np.asarray(out), np.asarray(ref_out),
                                   rtol=2e-2, atol=2e-2)
        np.testing.assert_array_equal(np.asarray(out_mask), np.asarray(ref_mask))

    key = jax.random.PRNGKey(0)
    k1, k2 = jax.random.split(key)
    # toy shapes from the module spec (single tile)
    run_case(2, 4, 16, 6, 3, [16, 9], k1)
    # multi-tile case: exercises the cross-tile conv halo path and K=5
    run_case(1, 8, 300, 8, 5, [257], k2)

    print("KERNEL_OK")
</pallas_src>

<mosaic_0001>
module attributes {stable_mosaic.version = 11 : i64} {
  func.func @masked_conv1d_kernel(%arg0: i32, %arg1: i32, %arg2: memref<1x4x128xbf16, #tpu.memory_space<vmem>>, %arg3: memref<1x4x128xbf16, #tpu.memory_space<vmem>>, %arg4: memref<1x1x128xf32, #tpu.memory_space<vmem>>, %arg5: memref<3x6x4xbf16, #tpu.memory_space<vmem>>, %arg6: memref<6x1xf32, #tpu.memory_space<vmem>>, %arg7: memref<1x6x128xf32, #tpu.memory_space<vmem>>) attributes {dimension_semantics = [#tpu.dimension_semantics<parallel>, #tpu.dimension_semantics<parallel>], iteration_bounds = array<i64: 2, 1>, scalar_prefetch = 0 : i64, scratch_operands = 0 : i64, tpu.core_type = #tpu.core_type<tc>, window_params = [{transform_indices = @transform_0, window_bounds = array<i64: 1, 4, 128>}, {transform_indices = @transform_1, window_bounds = array<i64: 1, 4, 128>}, {transform_indices = @transform_2, window_bounds = array<i64: 1, 1, 128>}, {pipeline_mode = #tpu.pipeline_mode<synchronous>, transform_indices = @transform_3, window_bounds = array<i64: 3, 6, 4>}, {pipeline_mode = #tpu.pipeline_mode<synchronous>, transform_indices = @transform_4, window_bounds = array<i64: 6, 1>}, {transform_indices = @transform_5, window_bounds = array<i64: 1, 6, 128>}]} {
    %c0 = arith.constant 0 : index
    %c0_0 = arith.constant 0 : index
    %c0_1 = arith.constant 0 : index
    %0 = vector.load %arg2[%c0, %c0_0, %c0_1] : memref<1x4x128xbf16, #tpu.memory_space<vmem>>, vector<1x4x128xbf16>
    %1 = vector.shape_cast %0 : vector<1x4x128xbf16> to vector<4x128xbf16>
    %c0_2 = arith.constant 0 : index
    %c0_3 = arith.constant 0 : index
    %c0_4 = arith.constant 0 : index
    %2 = vector.load %arg5[%c0_2, %c0_3, %c0_4] : memref<3x6x4xbf16, #tpu.memory_space<vmem>>, vector<1x6x4xbf16>
    %3 = vector.shape_cast %2 : vector<1x6x4xbf16> to vector<6x4xbf16>
    %cst = arith.constant dense<0.000000e+00> : vector<6x128xf32>
    %4 = tpu.matmul %3, %1, %cst {dimension_numbers = #tpu.dot_dimension_numbers<[1], [0], [0], [1], [0, 0, 1, 1], [], []>} : vector<6x4xbf16>, vector<4x128xbf16>, vector<6x128xf32> -> vector<6x128xf32>
    %c0_5 = arith.constant 0 : index
    %c0_6 = arith.constant 0 : index
    %c0_7 = arith.constant 0 : index
    %5 = vector.load %arg3[%c0_5, %c0_6, %c0_7] : memref<1x4x128xbf16, #tpu.memory_space<vmem>>, vector<1x4x128xbf16>
    %6 = vector.shape_cast %5 : vector<1x4x128xbf16> to vector<4x128xbf16>
    %7 = tpu.concatenate %1, %6 in 1 : vector<4x128xbf16>, vector<4x128xbf16> -> vector<4x256xbf16>
    %c1 = arith.constant 1 : index
    %c0_8 = arith.constant 0 : index
    %c0_9 = arith.constant 0 : index
    %8 = vector.load %arg5[%c1, %c0_8, %c0_9] : memref<3x6x4xbf16, #tpu.memory_space<vmem>>, vector<1x6x4xbf16>
    %9 = vector.shape_cast %8 : vector<1x6x4xbf16> to vector<6x4xbf16>
    %10 = vector.extract_strided_slice %7 {offsets = [0, 1], sizes = [4, 128], strides = [1, 1]} : vector<4x256xbf16> to vector<4x128xbf16>
    %cst_10 = arith.constant dense<0.000000e+00> : vector<6x128xf32>
    %11 = tpu.matmul %9, %10, %cst_10 {dimension_numbers = #tpu.dot_dimension_numbers<[1], [0], [0], [1], [0, 0, 1, 1], [], []>} : vector<6x4xbf16>, vector<4x128xbf16>, vector<6x128xf32> -> vector<6x128xf32>
    %12 = arith.addf %4, %11 : vector<6x128xf32>
    %c2 = arith.constant 2 : index
    %c0_11 = arith.constant 0 : index
    %c0_12 = arith.constant 0 : index
    %13 = vector.load %arg5[%c2, %c0_11, %c0_12] : memref<3x6x4xbf16, #tpu.memory_space<vmem>>, vector<1x6x4xbf16>
    %14 = vector.shape_cast %13 : vector<1x6x4xbf16> to vector<6x4xbf16>
    %15 = vector.extract_strided_slice %7 {offsets = [0, 2], sizes = [4, 128], strides = [1, 1]} : vector<4x256xbf16> to vector<4x128xbf16>
    %cst_13 = arith.constant dense<0.000000e+00> : vector<6x128xf32>
    %16 = tpu.matmul %14, %15, %cst_13 {dimension_numbers = #tpu.dot_dimension_numbers<[1], [0], [0], [1], [0, 0, 1, 1], [], []>} : vector<6x4xbf16>, vector<4x128xbf16>, vector<6x128xf32> -> vector<6x128xf32>
    %17 = arith.addf %12, %16 : vector<6x128xf32>
    %c0_14 = arith.constant 0 : index
    %c0_15 = arith.constant 0 : index
    %18 = vector.load %arg6[%c0_14, %c0_15] : memref<6x1xf32, #tpu.memory_space<vmem>>, vector<6x1xf32>
    %19 = vector.broadcast %18 : vector<6x1xf32> to vector<6x128xf32>
    %20 = arith.addf %17, %19 : vector<6x128xf32>
    %c0_16 = arith.constant 0 : index
    %c0_17 = arith.constant 0 : index
    %c0_18 = arith.constant 0 : index
    %21 = vector.load %arg4[%c0_16, %c0_17, %c0_18] : memref<1x1x128xf32, #tpu.memory_space<vmem>>, vector<1x1x128xf32>
    %22 = vector.shape_cast %21 : vector<1x1x128xf32> to vector<1x128xf32>
    %23 = vector.broadcast %22 : vector<1x128xf32> to vector<6x128xf32>
    %24 = arith.mulf %20, %23 : vector<6x128xf32>
    %c0_19 = arith.constant 0 : index
    %c0_20 = arith.constant 0 : index
    %c0_21 = arith.constant 0 : index
    %25 = vector.load %arg7[%c0_19, %c0_20, %c0_21] : memref<1x6x128xf32, #tpu.memory_space<vmem>>, vector<1x6x128xf32>
    %26 = vector.shape_cast %25 : vector<1x6x128xf32> to vector<6x128xf32>
    %27 = vector.shape_cast %24 : vector<6x128xf32> to vector<1x6x128xf32>
    tpu.vector_store %arg7[%c0_19, %c0_20, %c0_21], %27 {strides = array<i32>} : memref<1x6x128xf32, #tpu.memory_space<vmem>>, vector<1x6x128xf32>,
    return
  }
  func.func @transform_0(%arg0: i32, %arg1: i32) -> (i32, i32, i32) {
    %c0_i32 = arith.constant 0 : i32
    %c0_i32_0 = arith.constant 0 : i32
    return %arg0, %c0_i32, %arg1 : i32, i32, i32
  }
  func.func @transform_1(%arg0: i32, %arg1: i32) -> (i32, i32, i32) {
    %c1_i32 = arith.constant 1 : i32
    %0 = arith.addi %arg1, %c1_i32 : i32
    %c1_i32_0 = arith.constant 1 : i32
    %1 = arith.muli %0, %c1_i32_0 : i32
    %c0_i32 = arith.constant 0 : i32
    %c0_i32_1 = arith.constant 0 : i32
    return %arg0, %c0_i32, %1 : i32, i32, i32
  }
  func.func @transform_2(%arg0: i32, %arg1: i32) -> (i32, i32, i32) {
    %c0_i32 = arith.constant 0 : i32
    %c0_i32_0 = arith.constant 0 : i32
    return %arg0, %c0_i32, %arg1 : i32, i32, i32
  }
  func.func @transform_3(%arg0: i32, %arg1: i32) -> (i32, i32, i32) {
    %c0_i32 = arith.constant 0 : i32
    %c0_i32_0 = arith.constant 0 : i32
    %c0_i32_1 = arith.constant 0 : i32
    %c0_i32_2 = arith.constant 0 : i32
    return %c0_i32, %c0_i32_0, %c0_i32_1 : i32, i32, i32
  }
  func.func @transform_4(%arg0: i32, %arg1: i32) -> (i32, i32) {
    %c0_i32 = arith.constant 0 : i32
    %c0_i32_0 = arith.constant 0 : i32
    %c0_i32_1 = arith.constant 0 : i32
    return %c0_i32, %c0_i32_0 : i32, i32
  }
  func.func @transform_5(%arg0: i32, %arg1: i32) -> (i32, i32, i32) {
    %c0_i32 = arith.constant 0 : i32
    %c0_i32_0 = arith.constant 0 : i32
    return %arg0, %c0_i32, %arg1 : i32, i32, i32
  }
}

</mosaic_0001>

<bundles_post_ra>
// kernel: tpu_custom_call.1
= control target key start
LH: loop header
LB: loop body
LE: loop exit
PB: predicated region body
PF: predicated region fallthrough
CT: control target
= control target key end

     0   :  { %s738_s18 = smov 0   ;;  %s740_s19 = smov 0   ;;  %s803_s0 = inlined_call_operand.vmem [shape: bf16[2,4,256], index: 0, kind: input, shape index: {}]   ;;  %s804_s1 = inlined_call_operand.vmem [shape: bf16[2,4,256], index: 1, kind: input, shape index: {}]   ;;  %s805_s2 = inlined_call_operand.vmem [shape: f32[2,1,128], index: 2, kind: input, shape index: {}]   ;;  %s806_s3 = inlined_call_operand.vmem [shape: bf16[3,6,4], index: 3, kind: input, shape index: {}]   ;;  %s807_s4 = inlined_call_operand.vmem [shape: f32[6,1], index: 4, kind: input, shape index: {}]   ;;  %s808_s5 = inlined_call_operand.vmem [shape: f32[2,6,128], index: 5, kind: output, shape index: {}]  }
   0x1   :  { %s742_s20 = smov 0  }
   0x2 LB: > { %s27_s21 = sadd.s32 1, %s697_s19  ;;  %p607_p0 = scmp.ge.s32.totalorder %s701_s20, 1  ;;  %s701_s20 = sphi %s742_s20, %s15_s20   ;;  %s697_s19 = sphi %s740_s19, %s810_s19   ;;  %s693_s18 = sphi %s738_s18, %s809_s18  }
   0x3   : > { %p29_p1 = scmp.ge.s32.totalorder %s27_s21, 2  ;;  %p238_p2 = scmp.lt.s32.totalorder %s701_s20, 3 }
   0x5   : > { %s812_s21 = smov (%p29_p1, %s27_s21), 0  ;;  %p239_p3 = pnand %p607_p0, %p238_p2 }
   0x6   : > { %p286_p4 = scmp.lt.s32.totalorder (!%p239_p3), %s693_s18, 1  ;;  %v703_v0 = vmov (!%p239_p3), 0.0   ;;  %vm704_vm0 = vmmov (!%p239_p3), 0   ;;  %vm335_vm1 = vcmask (!%p239_p3), 1041408   ;;  %s705_s30 = smov (!%p239_p3), 126   ;;  %vm331_vm2 = vcmask (!%p239_p3), 31744  }
   0x7   : > { %242 = sbr.rel (%p239_p3) target bundleno = 369 (0x171), region = 40  ;;  %631 = vmatprep.subr.bf16.mxu0 (!%p239_p3), %v703_v0  ;;  %637 = vmatprep.subr.bf16.mxu1 (!%p239_p3), %v703_v0  ;;  %s706_s6 = smov (!%p239_p3), 127   ;;  %v319_v4 = vld [vmem:[%s806_s3] sm:$0x7] (!%p239_p3)  ;;  %v707_v5 = vmov (!%p239_p3), 0   ;;  %vm431_vm3 = vcmask (!%p239_p3), 1031168  }
   0x8   : > { %633 = vmatprep.mubr.msk.bf16.mxu0 (!%p239_p3), %vm704_vm0, %v703_v0  ;;  %639 = vmatprep.mubr.msk.bf16.mxu1 (!%p239_p3), %vm704_vm0, %v703_v0  ;;  %v480_v6 = vld [vmem:[%s807_s4] sm:$0x3f] (!%p239_p3)  ;;  %vm329_vm4 = vcmask (!%p239_p3), 1039360   ;;  %v616_v16 = vld [vmem:[%s806_s3 + $0x8] sm:$0x7] (!%p239_p3) }
   0x9   : > { %678 = vset.pattern.permute.xlu0 (!%p239_p3), %v707_v5  ;;  %v613_v14 = vld [vmem:[%s806_s3 + $0x4] sm:$0x7] (!%p239_p3) }
   0xe   : > { %s814_s18 = smov (!%p286_p4, %s693_s18), 1 }
   0xf   : > { %s621_s22 = sshll.u32 %s814_s18, 2  ;;  %s309_s17 = scalar_lea.vmem %s805_s2, %s814_s18 }
  0x10   : > { %s293_s25 = scalar_lea.vmem %s803_s0, %s621_s22  ;;  %s623_s26 = sadd.s32 2, %s621_s22  ;;  %v618_v31 = vld [vmem:[%s309_s17] ss:$0 sm:$0xff] }
  0x11   : > { %v318_v1 = vld [vmem:[%s293_s25] sm:$0x3]  ;;  %s302_s29 = scalar_lea.vmem %s804_s1, %s623_s26  ;;  %s612_s22 = sshll.u32 %s814_s18, 3 }
  0x12   : > { %427 = vrot.lane.b32.xlu1 %v318_v1, %s705_s30  ;;  %325 = vrot.lane.b32.xlu0 %v318_v1, %s706_s6  ;;  %v383_v2 = vsel %vm335_vm1, %v318_v1, 0  ;;  %v320_v3 = vld [vmem:[%s302_s29] sm:$0x3]  ;;  %s316_s25 = scalar_lea.vmem %s808_s5, %s612_s22 }
  0x13   : > { %638 = vmatpush3.bf16.msra.mxu1 %v383_v2 }
  0x16   : > { %429 = vrot.lane.b32.xlu1 %v320_v3, %s705_s30  ;;  %327 = vrot.lane.b32.xlu0 %v320_v3, %s706_s6 }
  0x17   : > { %640 = vmatmul.mubr.msk.bf16.vlgmr.msra.gmra.mrb[0].mxu1 %vm331_vm2, %v319_v4 }
  0x1a   : > { %483 = vperm.xlu0 %678, %v480_v6  }
  0x84   : > { %v428_v7 = vpop.permute.xlu1 %427  ;;  %v326_v8 = vpop.permute.xlu0 %325 }
  0x88   : > { %v430_v9 = vpop.permute.xlu1 %429  ;;  %v328_v10 = vpop.permute.xlu0 %327 }
  0x89   : > { %v432_v11 = vsel %vm431_vm3, %v428_v7, %v430_v9  ;;  %v330_v12 = vsel %vm329_vm4, %v326_v8, %v328_v10 }
  0x8a   : > { %v337_v13 = vsel %vm335_vm1, %v330_v12, 0  ;;  %v437_v15 = vsel %vm335_vm1, %v432_v11, 0 }
  0x8b   : > { %632 = vmatpush3.bf16.msra.mxu0 %v337_v13 }
  0x8c   : > { %643 = vmatprep.subr.bf16.mxu0 %v703_v0 }
  0x8e   : > { %634 = vmatmul.mubr.msk.bf16.vlgmr.msra.gmra.mrb[0].mxu0 %vm331_vm2, %v613_v14 }
  0x8f   : > { %644 = vmatpush3.bf16.msra.mxu0 %v437_v15  ;;  %645 = vmatprep.mubr.msk.bf16.mxu0 %vm704_vm0, %v703_v0 }
  0x96   : > { %646 = vmatmul.mubr.msk.bf16.vlgmr.msra.gmra.mrb[4].mxu0 %vm331_vm2, %v616_v16 }
  0x99   : > { %v484_v27 = vpop.permute.xlu0 %483 }
  0xea   : > { %v419_v17 = vpop.f32.mrb[0].mxu1 }
  0xeb   : > { %v641_v18 = vpop.f32.mrb[1].mxu1 }
  0xec   : > { %v422_v19 = vpop.f32.mrb[2].mxu1 }
  0xed   : > { %v642_v20 = vpop.f32.mrb[3].mxu1 }
 0x161   : > { %v373_v21 = vpop.f32.mrb[0].mxu0 }
 0x162   : > { %v635_v22 = vpop.f32.mrb[1].mxu0  ;;  %v420_v23 = vadd.f32 %v419_v17, %v373_v21 }
 0x163   : > { %v376_v24 = vpop.f32.mrb[2].mxu0 }
 0x164   : > { %v636_v25 = vpop.f32.mrb[3].mxu0 }
 0x169   : > { %v473_v26 = vpop.f32.mrb[4].mxu0 }
 0x16a   : > { %v479_v28 = vadd.f32 %v473_v26, %v420_v23  ;;  %v647_v29 = vpop.f32.mrb[5].mxu0 }
 0x16b   : > { %v476_v30 = vpop.f32.mrb[6].mxu0 }
 0x16c   : > { %v486_v32 = vadd.f32 %v484_v27, %v479_v28  ;;  %v648_v33 = vpop.f32.mrb[7].mxu0 }
 0x16e   : > { %v494_v34 = vmul.f32 %v618_v31, %v486_v32 }
 0x170   : > { %495 = vst [vmem:[%s316_s25] sm:$0x3f] %v494_v34 }
 0x171 PF: > { %s15_s20 = sadd.s32 1, %s701_s20   ;;  %s809_s18 = smov %s697_s19 }
 0x172   : > { %p12_p5 = scmp.ge.s32.totalorder %s15_s20, 4   ;;  %s810_s19 = smov %s812_s21 }
 0x174   :  { %14 = sbr.rel (!%p12_p5) target bundleno = 2 (0x2), region = 78 }

</bundles_post_ra>
